<compile_context>
chip_gen: v6e
topology: v6e:2x2x1
jax: 0.10.0
libtpu: 0.0.40
codegen_flags: <defaults>
</compile_context>

<pallas_src>
import functools

import jax
import jax.numpy as jnp
from jax.experimental import pallas as pl
from jax.experimental.pallas import tpu as pltpu


# ---------------------------------------------------------------------------
# fused three-phase ResBlock kernel
# ---------------------------------------------------------------------------

def _resblock_kernel(x_ref, w1_ref, b1_ref, g1_ref, be1_ref,
                     w2_ref, b2_ref, g2_ref, be2_ref,
                     o_ref,
                     zy_ref, z2_ref, s1_ref, q1_ref, s2_ref, q2_ref,
                     *, k1, seq_len, eps, n_rows):
    """x_ref: (T + k1 - 1, Cin) pre-padded channels-last slab of one batch item.
    w1_ref: (k1*Cin, C1) tap-major concatenated conv1 weight.  w2_ref: (C1, C2).
    b*/g*/be*: (1, C) conv bias / BN gamma / BN beta.  o_ref: (T, C2).
    zy_ref: (B, T, C1) scratch (z1, later overwritten by y1).
    z2_ref: (B, T, C2) scratch (pre-BN conv2 output).
    s*/q*: (1, C) per-channel sum / sum-of-squares accumulators."""
    p = pl.program_id(0)                    # phase (serial)
    b = pl.program_id(1)                    # batch element
    t_pad = x_ref.shape[0]                  # T + k1 - 1
    inv_n = 1.0 / float(n_rows)             # BN batch-stat count = B * T

    @pl.when(jnp.logical_and(p == 0, b == 0))
    def _init_stats():
        s1_ref[...] = jnp.zeros_like(s1_ref)
        q1_ref[...] = jnp.zeros_like(q1_ref)
        s2_ref[...] = jnp.zeros_like(s2_ref)
        q2_ref[...] = jnp.zeros_like(q2_ref)

    # ---- phase 0: conv1 (single K = k1*Cin matmul) + bias, stash pre-BN z1
    @pl.when(p == 0)
    def _conv1():
        xp = x_ref[...]                                        # (T+4, Cin)
        # Tap j needs rows [j : j+T].  Use an XLU sublane roll (shift == -j)
        # followed by an aligned [0:T] slice instead of a misaligned slice,
        # then concatenate taps on the lane axis for one big MXU matmul.
        taps = [xp[0:seq_len, :]]
        for j in range(1, k1):
            taps.append(pltpu.roll(xp, t_pad - j, 0)[0:seq_len, :])
        xcat = jnp.concatenate(taps, axis=1)                   # (T, k1*Cin)
        z1 = jnp.dot(xcat, w1_ref[...], preferred_element_type=jnp.float32)
        z1 = z1 + b1_ref[...].astype(jnp.float32)              # conv bias
        zy_ref[b] = z1
        # single-traversal BN statistics (sum and sum-of-squares together)
        s1_ref[...] = s1_ref[...] + jnp.sum(z1, axis=0, keepdims=True)
        q1_ref[...] = q1_ref[...] + jnp.sum(z1 * z1, axis=0, keepdims=True)

    # ---- phase 1: BN1 (batch stats) + ReLU + conv2 (k=1 matmul) + bias
    @pl.when(p == 1)
    def _bn1_relu_conv2():
        mean1 = s1_ref[...] * inv_n
        var1 = q1_ref[...] * inv_n - mean1 * mean1              # biased variance
        scale1 = g1_ref[...].astype(jnp.float32) * jax.lax.rsqrt(var1 + eps)
        shift1 = be1_ref[...].astype(jnp.float32) - mean1 * scale1
        y1 = jnp.maximum(zy_ref[b] * scale1 + shift1, 0.0)      # BN1 + ReLU
        zy_ref[b] = y1                                           # reuse slab z1 -> y1
        z2 = jnp.dot(y1.astype(w2_ref.dtype), w2_ref[...],
                     preferred_element_type=jnp.float32)
        z2 = z2 + b2_ref[...].astype(jnp.float32)
        z2_ref[b] = z2
        s2_ref[...] = s2_ref[...] + jnp.sum(z2, axis=0, keepdims=True)
        q2_ref[...] = q2_ref[...] + jnp.sum(z2 * z2, axis=0, keepdims=True)

    # ---- phase 2: BN2 + ReLU + residual add, lane-dense store
    @pl.when(p == 2)
    def _finalize():
        mean2 = s2_ref[...] * inv_n
        var2 = q2_ref[...] * inv_n - mean2 * mean2
        scale2 = g2_ref[...].astype(jnp.float32) * jax.lax.rsqrt(var2 + eps)
        shift2 = be2_ref[...].astype(jnp.float32) - mean2 * scale2
        y2 = jnp.maximum(z2_ref[b] * scale2 + shift2, 0.0)      # BN2 + ReLU
        o_ref[...] = (zy_ref[b] + y2).astype(o_ref.dtype)       # y1 + y2


# ---------------------------------------------------------------------------
# JAX wrapper
# ---------------------------------------------------------------------------

def resblock_forward(params, x):
    """x: (B, Cin, T) (PyTorch NCL layout) -> (B, Cout, T)."""
    w1, b1, g1, be1 = params["w1"], params["b1"], params["g1"], params["be1"]
    w2, b2, g2, be2 = params["w2"], params["b2"], params["g2"], params["be2"]

    B, Cin, T = x.shape
    k1, _, C1 = w1.shape
    C2 = w2.shape[-1]
    pad = (k1 - 1) // 2
    t_pad = T + 2 * pad

    # TODO(synk): accept channels-last input from the producer to skip this
    # relayout pass (XLA fuses the transpose and the 2-row halo pad into one copy).
    x_cl = jnp.transpose(x, (0, 2, 1))                    # (B, T, Cin)
    xp = jnp.pad(x_cl, ((0, 0), (pad, pad), (0, 0)))      # (B, T+4, Cin)
    w1cat = w1.reshape(k1 * Cin, C1)                      # K-concatenated weight

    grid = (3, B)                                          # (phase, batch)

    def x_index(p, b):
        # x is consumed only in phase 0; keep pointing at the last fetched block
        # afterwards so Pallas does not re-DMA it during phases 1 and 2.
        return (jnp.where(p == 0, b, B - 1), 0, 0)

    def o_index(p, b):
        # output is written only in phase 2; park on block 0 before that so no
        # garbage block is ever written back (block index never changes early).
        return (jnp.where(p == 2, b, 0), 0, 0)

    def const2d(arr):
        return pl.BlockSpec(arr.shape, lambda p, b: (0, 0))

    in_specs = [
        pl.BlockSpec((None, t_pad, Cin), x_index),         # squeezed batch dim
        const2d(w1cat), const2d(b1), const2d(g1), const2d(be1),
        const2d(w2), const2d(b2), const2d(g2), const2d(be2),
    ]
    out_spec = pl.BlockSpec((None, T, C2), o_index)

    # VMEM footprint: 2 resident f32 intermediates + pipelined per-batch tiles
    # + weights + stat accumulators (see TODO about spilling for very long T).
    f32 = 4
    footprint = (
        B * T * C1 * f32 + B * T * C2 * f32
        + 4 * 8 * max(C1, C2) * f32
        + 2 * (t_pad * Cin + T * C2) * x.dtype.itemsize
        + 2 * (k1 * Cin * C1 + C1 * C2 + 6 * max(C1, C2)) * w1.dtype.itemsize
    )
    vmem_limit = int(min(96 * 2**20, max(2 * footprint + (2 << 20), 16 << 20)))

    kern = functools.partial(_resblock_kernel, k1=k1, seq_len=T,
                             eps=1e-5, n_rows=B * T)       # BatchNorm1d eps

    y_cl = pl.pallas_call(
        kern,
        grid=grid,
        out_shape=jax.ShapeDtypeStruct((B, T, C2), x.dtype),
        in_specs=in_specs,
        out_specs=out_spec,
        scratch_shapes=[
            pltpu.VMEM((B, T, C1), jnp.float32),   # z1 (later y1)
            pltpu.VMEM((B, T, C2), jnp.float32),   # pre-BN conv2 output
            pltpu.VMEM((1, C1), jnp.float32),      # sum(z1)
            pltpu.VMEM((1, C1), jnp.float32),      # sum(z1^2)
            pltpu.VMEM((1, C2), jnp.float32),      # sum(z2)
            pltpu.VMEM((1, C2), jnp.float32),      # sum(z2^2)
        ],
        compiler_params=pltpu.CompilerParams(
            # Both axes serial: BN batch stats accumulate across the batch axis
            # and the phases are ordered (see TODO for a "parallel"-able variant).
            dimension_semantics=("arbitrary", "arbitrary"),
            vmem_limit_bytes=vmem_limit,
        ),
    )(xp, w1cat, b1, g1, be1, w2, b2, g2, be2)

    return jnp.transpose(y_cl, (0, 2, 1))                  # back to (B, C, T)


# ---------------------------------------------------------------------------
# pure-JAX reference (same math, no Pallas) for a correctness smoke check
# ---------------------------------------------------------------------------

def resblock_reference(params, x):
    w1, b1, g1, be1 = params["w1"], params["b1"], params["g1"], params["be1"]
    w2, b2, g2, be2 = params["w2"], params["b2"], params["g2"], params["be2"]
    B, Cin, T = x.shape
    k1 = w1.shape[0]
    pad = (k1 - 1) // 2
    eps = 1e-5

    x_cl = jnp.transpose(x, (0, 2, 1)).astype(jnp.float32)
    xp = jnp.pad(x_cl, ((0, 0), (pad, pad), (0, 0)))

    z1 = sum(jnp.einsum("btc,co->bto", xp[:, j:j + T, :], w1[j]) for j in range(k1))
    z1 = (z1 + b1).reshape(B * T, -1)
    m1 = jnp.mean(z1, 0, keepdims=True)
    v1 = jnp.var(z1, 0, keepdims=True)
    y1 = jnp.maximum((z1 - m1) * jax.lax.rsqrt(v1 + eps) * g1 + be1, 0.0)

    z2 = y1 @ w2 + b2
    m2 = jnp.mean(z2, 0, keepdims=True)
    v2 = jnp.var(z2, 0, keepdims=True)
    y2 = jnp.maximum((z2 - m2) * jax.lax.rsqrt(v2 + eps) * g2 + be2, 0.0)

    out = (y1 + y2).reshape(B, T, -1)
    return jnp.transpose(out, (0, 2, 1)).astype(x.dtype)


# ---------------------------------------------------------------------------
# main
# ---------------------------------------------------------------------------

if __name__ == "__main__":
    # Small, lane-dense shapes consistent with the module defaults
    # (ResBlock default channels 256 scaled down to 128 = one full lane width).
    B, T = 2, 16
    Cin, C1, C2 = 128, 128, 128
    k1 = 5

    key = jax.random.PRNGKey(0)
    ks = jax.random.split(key, 9)

    def nrm(k, shape, scale):
        return scale * jax.random.normal(k, shape, jnp.float32)

    params = {
        # conv1: tap-major transposed weight (k, Cin, Cout) == torch weight[o,c,j].T
        "w1": nrm(ks[0], (k1, Cin, C1), 0.05),
        "b1": nrm(ks[1], (1, C1), 0.05),
        "g1": 1.0 + nrm(ks[2], (1, C1), 0.05),     # BN1 gamma
        "be1": nrm(ks[3], (1, C1), 0.05),          # BN1 beta
        # conv2: kernel_size=1 -> (Cin, Cout) matmul weight
        "w2": nrm(ks[4], (C1, C2), 0.05),
        "b2": nrm(ks[5], (1, C2), 0.05),
        "g2": 1.0 + nrm(ks[6], (1, C2), 0.05),     # BN2 gamma
        "be2": nrm(ks[7], (1, C2), 0.05),          # BN2 beta
    }
    x = jax.random.normal(ks[8], (B, Cin, T), jnp.float32)

    fwd = jax.jit(resblock_forward)
    y = jax.block_until_ready(fwd(params, x))

    assert y.shape == (B, C2, T), y.shape
    assert bool(jnp.all(jnp.isfinite(y)))

    y_ref = jax.block_until_ready(jax.jit(resblock_reference)(params, x))
    assert bool(jnp.allclose(y, y_ref, rtol=2e-3, atol=2e-3)), \
        float(jnp.max(jnp.abs(y - y_ref)))

    print("KERNEL_OK")
</pallas_src>

<mosaic_0001>
module attributes {stable_mosaic.version = 11 : i64} {
  func.func @_resblock_kernel(%arg0: i32, %arg1: i32, %arg2: memref<1x20x128xf32, #tpu.memory_space<vmem>>, %arg3: memref<640x128xf32, #tpu.memory_space<vmem>>, %arg4: memref<1x128xf32, #tpu.memory_space<vmem>>, %arg5: memref<1x128xf32, #tpu.memory_space<vmem>>, %arg6: memref<1x128xf32, #tpu.memory_space<vmem>>, %arg7: memref<128x128xf32, #tpu.memory_space<vmem>>, %arg8: memref<1x128xf32, #tpu.memory_space<vmem>>, %arg9: memref<1x128xf32, #tpu.memory_space<vmem>>, %arg10: memref<1x128xf32, #tpu.memory_space<vmem>>, %arg11: memref<1x16x128xf32, #tpu.memory_space<vmem>>, %arg12: memref<2x16x128xf32, #tpu.memory_space<vmem>>, %arg13: memref<2x16x128xf32, #tpu.memory_space<vmem>>, %arg14: memref<1x128xf32, #tpu.memory_space<vmem>>, %arg15: memref<1x128xf32, #tpu.memory_space<vmem>>, %arg16: memref<1x128xf32, #tpu.memory_space<vmem>>, %arg17: memref<1x128xf32, #tpu.memory_space<vmem>>) attributes {dimension_semantics = [#tpu.dimension_semantics<arbitrary>, #tpu.dimension_semantics<arbitrary>], iteration_bounds = array<i64: 3, 2>, scalar_prefetch = 0 : i64, scratch_operands = 6 : i64, tpu.core_type = #tpu.core_type<tc>, window_params = [{transform_indices = @transform_0, window_bounds = array<i64: 1, 20, 128>}, {pipeline_mode = #tpu.pipeline_mode<synchronous>, transform_indices = @transform_1, window_bounds = array<i64: 640, 128>}, {pipeline_mode = #tpu.pipeline_mode<synchronous>, transform_indices = @transform_2, window_bounds = array<i64: 1, 128>}, {pipeline_mode = #tpu.pipeline_mode<synchronous>, transform_indices = @transform_3, window_bounds = array<i64: 1, 128>}, {pipeline_mode = #tpu.pipeline_mode<synchronous>, transform_indices = @transform_4, window_bounds = array<i64: 1, 128>}, {pipeline_mode = #tpu.pipeline_mode<synchronous>, transform_indices = @transform_5, window_bounds = array<i64: 128, 128>}, {pipeline_mode = #tpu.pipeline_mode<synchronous>, transform_indices = @transform_6, window_bounds = array<i64: 1, 128>}, {pipeline_mode = #tpu.pipeline_mode<synchronous>, transform_indices = @transform_7, window_bounds = array<i64: 1, 128>}, {pipeline_mode = #tpu.pipeline_mode<synchronous>, transform_indices = @transform_8, window_bounds = array<i64: 1, 128>}, {transform_indices = @transform_9, window_bounds = array<i64: 1, 16, 128>}]} {
    %c0_i32 = arith.constant 0 : i32
    %0 = arith.cmpi eq, %arg0, %c0_i32 : i32
    %c0_i32_0 = arith.constant 0 : i32
    %1 = arith.cmpi eq, %arg1, %c0_i32_0 : i32
    %2 = arith.andi %0, %1 : i1
    %3 = arith.extui %2 : i1 to i32
    %c0_i32_1 = arith.constant 0 : i32
    %4 = arith.cmpi ne, %3, %c0_i32_1 : i32
    scf.if %4 {
      %cst = arith.constant 0.000000e+00 : f32
      %14 = vector.broadcast %cst : f32 to vector<1x128xf32>
      %c0 = arith.constant 0 : index
      %c0_6 = arith.constant 0 : index
      %15 = vector.load %arg14[%c0, %c0_6] : memref<1x128xf32, #tpu.memory_space<vmem>>, vector<1x128xf32>
      tpu.vector_store %arg14[%c0, %c0_6], %14 {strides = array<i32>} : memref<1x128xf32, #tpu.memory_space<vmem>>, vector<1x128xf32>,
      %cst_7 = arith.constant 0.000000e+00 : f32
      %16 = vector.broadcast %cst_7 : f32 to vector<1x128xf32>
      %c0_8 = arith.constant 0 : index
      %c0_9 = arith.constant 0 : index
      %17 = vector.load %arg15[%c0_8, %c0_9] : memref<1x128xf32, #tpu.memory_space<vmem>>, vector<1x128xf32>
      tpu.vector_store %arg15[%c0_8, %c0_9], %16 {strides = array<i32>} : memref<1x128xf32, #tpu.memory_space<vmem>>, vector<1x128xf32>,
      %cst_10 = arith.constant 0.000000e+00 : f32
      %18 = vector.broadcast %cst_10 : f32 to vector<1x128xf32>
      %c0_11 = arith.constant 0 : index
      %c0_12 = arith.constant 0 : index
      %19 = vector.load %arg16[%c0_11, %c0_12] : memref<1x128xf32, #tpu.memory_space<vmem>>, vector<1x128xf32>
      tpu.vector_store %arg16[%c0_11, %c0_12], %18 {strides = array<i32>} : memref<1x128xf32, #tpu.memory_space<vmem>>, vector<1x128xf32>,
      %cst_13 = arith.constant 0.000000e+00 : f32
      %20 = vector.broadcast %cst_13 : f32 to vector<1x128xf32>
      %c0_14 = arith.constant 0 : index
      %c0_15 = arith.constant 0 : index
      %21 = vector.load %arg17[%c0_14, %c0_15] : memref<1x128xf32, #tpu.memory_space<vmem>>, vector<1x128xf32>
      tpu.vector_store %arg17[%c0_14, %c0_15], %20 {strides = array<i32>} : memref<1x128xf32, #tpu.memory_space<vmem>>, vector<1x128xf32>,
    } else {
    }
    %c0_i32_2 = arith.constant 0 : i32
    %5 = arith.cmpi eq, %arg0, %c0_i32_2 : i32
    %6 = arith.extui %5 : i1 to i32
    %c0_i32_3 = arith.constant 0 : i32
    %7 = arith.cmpi ne, %6, %c0_i32_3 : i32
    scf.if %7 {
      %c0 = arith.constant 0 : index
      %c0_6 = arith.constant 0 : index
      %c0_7 = arith.constant 0 : index
      %14 = vector.load %arg2[%c0, %c0_6, %c0_7] : memref<1x20x128xf32, #tpu.memory_space<vmem>>, vector<1x20x128xf32>
      %15 = vector.shape_cast %14 : vector<1x20x128xf32> to vector<20x128xf32>
      %16 = vector.extract_strided_slice %15 {offsets = [0, 0], sizes = [16, 128], strides = [1, 1]} : vector<20x128xf32> to vector<16x128xf32>
      %c19_i32 = arith.constant 19 : i32
      %17 = tpu.dynamic_rotate %15 by %c19_i32 dim 0 : vector<20x128xf32>, i32 -> vector<20x128xf32>
      %18 = vector.extract_strided_slice %17 {offsets = [0, 0], sizes = [16, 128], strides = [1, 1]} : vector<20x128xf32> to vector<16x128xf32>
      %c18_i32 = arith.constant 18 : i32
      %19 = tpu.dynamic_rotate %15 by %c18_i32 dim 0 : vector<20x128xf32>, i32 -> vector<20x128xf32>
      %20 = vector.extract_strided_slice %19 {offsets = [0, 0], sizes = [16, 128], strides = [1, 1]} : vector<20x128xf32> to vector<16x128xf32>
      %c17_i32 = arith.constant 17 : i32
      %21 = tpu.dynamic_rotate %15 by %c17_i32 dim 0 : vector<20x128xf32>, i32 -> vector<20x128xf32>
      %22 = vector.extract_strided_slice %21 {offsets = [0, 0], sizes = [16, 128], strides = [1, 1]} : vector<20x128xf32> to vector<16x128xf32>
      %c16_i32 = arith.constant 16 : i32
      %23 = tpu.dynamic_rotate %15 by %c16_i32 dim 0 : vector<20x128xf32>, i32 -> vector<20x128xf32>
      %24 = vector.extract_strided_slice %23 {offsets = [0, 0], sizes = [16, 128], strides = [1, 1]} : vector<20x128xf32> to vector<16x128xf32>
      %25 = tpu.concatenate %16, %18, %20, %22, %24 in 1 : vector<16x128xf32>, vector<16x128xf32>, vector<16x128xf32>, vector<16x128xf32>, vector<16x128xf32> -> vector<16x640xf32>
      %c0_8 = arith.constant 0 : index
      %c0_9 = arith.constant 0 : index
      %26 = vector.load %arg3[%c0_8, %c0_9] : memref<640x128xf32, #tpu.memory_space<vmem>>, vector<640x128xf32>
      %cst = arith.constant dense<0.000000e+00> : vector<16x128xf32>
      %27 = tpu.matmul %25, %26, %cst {dimension_numbers = #tpu.dot_dimension_numbers<[1], [0], [0], [1], [0, 0, 1, 1], [], []>} : vector<16x640xf32>, vector<640x128xf32>, vector<16x128xf32> -> vector<16x128xf32>
      %c0_10 = arith.constant 0 : index
      %c0_11 = arith.constant 0 : index
      %28 = vector.load %arg4[%c0_10, %c0_11] : memref<1x128xf32, #tpu.memory_space<vmem>>, vector<1x128xf32>
      %29 = vector.broadcast %28 : vector<1x128xf32> to vector<16x128xf32>
      %30 = arith.addf %27, %29 : vector<16x128xf32>
      %31 = arith.index_cast %arg1 : i32 to index
      %c0_12 = arith.constant 0 : index
      %c0_13 = arith.constant 0 : index
      %32 = vector.load %arg12[%31, %c0_12, %c0_13] : memref<2x16x128xf32, #tpu.memory_space<vmem>>, vector<1x16x128xf32>
      %33 = vector.shape_cast %32 : vector<1x16x128xf32> to vector<16x128xf32>
      %34 = vector.shape_cast %30 : vector<16x128xf32> to vector<1x16x128xf32>
      tpu.vector_store %arg12[%31, %c0_12, %c0_13], %34 {strides = array<i32>} : memref<2x16x128xf32, #tpu.memory_space<vmem>>, vector<1x16x128xf32>,
      %c0_14 = arith.constant 0 : index
      %c0_15 = arith.constant 0 : index
      %35 = vector.load %arg14[%c0_14, %c0_15] : memref<1x128xf32, #tpu.memory_space<vmem>>, vector<1x128xf32>
      %cst_16 = arith.constant dense<0.000000e+00> : vector<128xf32>
      %36 = vector.multi_reduction <add>, %30, %cst_16 [0] : vector<16x128xf32> to vector<128xf32>
      %37 = vector.shape_cast %36 : vector<128xf32> to vector<1x128xf32>
      %38 = arith.addf %35, %37 : vector<1x128xf32>
      %c0_17 = arith.constant 0 : index
      %c0_18 = arith.constant 0 : index
      %39 = vector.load %arg14[%c0_17, %c0_18] : memref<1x128xf32, #tpu.memory_space<vmem>>, vector<1x128xf32>
      tpu.vector_store %arg14[%c0_17, %c0_18], %38 {strides = array<i32>} : memref<1x128xf32, #tpu.memory_space<vmem>>, vector<1x128xf32>,
      %c0_19 = arith.constant 0 : index
      %c0_20 = arith.constant 0 : index
      %40 = vector.load %arg15[%c0_19, %c0_20] : memref<1x128xf32, #tpu.memory_space<vmem>>, vector<1x128xf32>
      %41 = arith.mulf %30, %30 : vector<16x128xf32>
      %cst_21 = arith.constant dense<0.000000e+00> : vector<128xf32>
      %42 = vector.multi_reduction <add>, %41, %cst_21 [0] : vector<16x128xf32> to vector<128xf32>
      %43 = vector.shape_cast %42 : vector<128xf32> to vector<1x128xf32>
      %44 = arith.addf %40, %43 : vector<1x128xf32>
      %c0_22 = arith.constant 0 : index
      %c0_23 = arith.constant 0 : index
      %45 = vector.load %arg15[%c0_22, %c0_23] : memref<1x128xf32, #tpu.memory_space<vmem>>, vector<1x128xf32>
      tpu.vector_store %arg15[%c0_22, %c0_23], %44 {strides = array<i32>} : memref<1x128xf32, #tpu.memory_space<vmem>>, vector<1x128xf32>,
    } else {
    }
    %c1_i32 = arith.constant 1 : i32
    %8 = arith.cmpi eq, %arg0, %c1_i32 : i32
    %9 = arith.extui %8 : i1 to i32
    %c0_i32_4 = arith.constant 0 : i32
    %10 = arith.cmpi ne, %9, %c0_i32_4 : i32
    scf.if %10 {
      %c0 = arith.constant 0 : index
      %c0_6 = arith.constant 0 : index
      %14 = vector.load %arg14[%c0, %c0_6] : memref<1x128xf32, #tpu.memory_space<vmem>>, vector<1x128xf32>
      %cst = arith.constant 3.125000e-02 : f32
      %15 = vector.broadcast %cst : f32 to vector<1x128xf32>
      %16 = arith.mulf %14, %15 : vector<1x128xf32>
      %c0_7 = arith.constant 0 : index
      %c0_8 = arith.constant 0 : index
      %17 = vector.load %arg15[%c0_7, %c0_8] : memref<1x128xf32, #tpu.memory_space<vmem>>, vector<1x128xf32>
      %cst_9 = arith.constant 3.125000e-02 : f32
      %18 = vector.broadcast %cst_9 : f32 to vector<1x128xf32>
      %19 = arith.mulf %17, %18 : vector<1x128xf32>
      %20 = arith.mulf %16, %16 : vector<1x128xf32>
      %21 = arith.subf %19, %20 : vector<1x128xf32>
      %c0_10 = arith.constant 0 : index
      %c0_11 = arith.constant 0 : index
      %22 = vector.load %arg5[%c0_10, %c0_11] : memref<1x128xf32, #tpu.memory_space<vmem>>, vector<1x128xf32>
      %cst_12 = arith.constant 9.99999974E-6 : f32
      %23 = vector.broadcast %cst_12 : f32 to vector<1x128xf32>
      %24 = arith.addf %21, %23 : vector<1x128xf32>
      %25 = math.rsqrt %24 : vector<1x128xf32>
      %26 = arith.mulf %22, %25 : vector<1x128xf32>
      %c0_13 = arith.constant 0 : index
      %c0_14 = arith.constant 0 : index
      %27 = vector.load %arg6[%c0_13, %c0_14] : memref<1x128xf32, #tpu.memory_space<vmem>>, vector<1x128xf32>
      %28 = arith.mulf %16, %26 : vector<1x128xf32>
      %29 = arith.subf %27, %28 : vector<1x128xf32>
      %30 = arith.index_cast %arg1 : i32 to index
      %c0_15 = arith.constant 0 : index
      %c0_16 = arith.constant 0 : index
      %31 = vector.load %arg12[%30, %c0_15, %c0_16] : memref<2x16x128xf32, #tpu.memory_space<vmem>>, vector<1x16x128xf32>
      %32 = vector.shape_cast %31 : vector<1x16x128xf32> to vector<16x128xf32>
      %33 = vector.broadcast %26 : vector<1x128xf32> to vector<16x128xf32>
      %34 = arith.mulf %32, %33 : vector<16x128xf32>
      %35 = vector.broadcast %29 : vector<1x128xf32> to vector<16x128xf32>
      %36 = arith.addf %34, %35 : vector<16x128xf32>
      %cst_17 = arith.constant 0.000000e+00 : f32
      %37 = vector.broadcast %cst_17 : f32 to vector<16x128xf32>
      %38 = arith.maximumf %36, %37 : vector<16x128xf32>
      %39 = arith.index_cast %arg1 : i32 to index
      %c0_18 = arith.constant 0 : index
      %c0_19 = arith.constant 0 : index
      %40 = vector.load %arg12[%39, %c0_18, %c0_19] : memref<2x16x128xf32, #tpu.memory_space<vmem>>, vector<1x16x128xf32>
      %41 = vector.shape_cast %40 : vector<1x16x128xf32> to vector<16x128xf32>
      %42 = vector.shape_cast %38 : vector<16x128xf32> to vector<1x16x128xf32>
      tpu.vector_store %arg12[%39, %c0_18, %c0_19], %42 {strides = array<i32>} : memref<2x16x128xf32, #tpu.memory_space<vmem>>, vector<1x16x128xf32>,
      %c0_20 = arith.constant 0 : index
      %c0_21 = arith.constant 0 : index
      %43 = vector.load %arg7[%c0_20, %c0_21] : memref<128x128xf32, #tpu.memory_space<vmem>>, vector<128x128xf32>
      %cst_22 = arith.constant dense<0.000000e+00> : vector<16x128xf32>
      %44 = tpu.matmul %38, %43, %cst_22 {dimension_numbers = #tpu.dot_dimension_numbers<[1], [0], [0], [1], [0, 0, 1, 1], [], []>} : vector<16x128xf32>, vector<128x128xf32>, vector<16x128xf32> -> vector<16x128xf32>
      %c0_23 = arith.constant 0 : index
      %c0_24 = arith.constant 0 : index
      %45 = vector.load %arg8[%c0_23, %c0_24] : memref<1x128xf32, #tpu.memory_space<vmem>>, vector<1x128xf32>
      %46 = vector.broadcast %45 : vector<1x128xf32> to vector<16x128xf32>
      %47 = arith.addf %44, %46 : vector<16x128xf32>
      %48 = arith.index_cast %arg1 : i32 to index
      %c0_25 = arith.constant 0 : index
      %c0_26 = arith.constant 0 : index
      %49 = vector.load %arg13[%48, %c0_25, %c0_26] : memref<2x16x128xf32, #tpu.memory_space<vmem>>, vector<1x16x128xf32>
      %50 = vector.shape_cast %49 : vector<1x16x128xf32> to vector<16x128xf32>
      %51 = vector.shape_cast %47 : vector<16x128xf32> to vector<1x16x128xf32>
      tpu.vector_store %arg13[%48, %c0_25, %c0_26], %51 {strides = array<i32>} : memref<2x16x128xf32, #tpu.memory_space<vmem>>, vector<1x16x128xf32>,
      %c0_27 = arith.constant 0 : index
      %c0_28 = arith.constant 0 : index
      %52 = vector.load %arg16[%c0_27, %c0_28] : memref<1x128xf32, #tpu.memory_space<vmem>>, vector<1x128xf32>
      %cst_29 = arith.constant dense<0.000000e+00> : vector<128xf32>
      %53 = vector.multi_reduction <add>, %47, %cst_29 [0] : vector<16x128xf32> to vector<128xf32>
      %54 = vector.shape_cast %53 : vector<128xf32> to vector<1x128xf32>
      %55 = arith.addf %52, %54 : vector<1x128xf32>
      %c0_30 = arith.constant 0 : index
      %c0_31 = arith.constant 0 : index
      %56 = vector.load %arg16[%c0_30, %c0_31] : memref<1x128xf32, #tpu.memory_space<vmem>>, vector<1x128xf32>
      tpu.vector_store %arg16[%c0_30, %c0_31], %55 {strides = array<i32>} : memref<1x128xf32, #tpu.memory_space<vmem>>, vector<1x128xf32>,
      %c0_32 = arith.constant 0 : index
      %c0_33 = arith.constant 0 : index
      %57 = vector.load %arg17[%c0_32, %c0_33] : memref<1x128xf32, #tpu.memory_space<vmem>>, vector<1x128xf32>
      %58 = arith.mulf %47, %47 : vector<16x128xf32>
      %cst_34 = arith.constant dense<0.000000e+00> : vector<128xf32>
      %59 = vector.multi_reduction <add>, %58, %cst_34 [0] : vector<16x128xf32> to vector<128xf32>
      %60 = vector.shape_cast %59 : vector<128xf32> to vector<1x128xf32>
      %61 = arith.addf %57, %60 : vector<1x128xf32>
      %c0_35 = arith.constant 0 : index
      %c0_36 = arith.constant 0 : index
      %62 = vector.load %arg17[%c0_35, %c0_36] : memref<1x128xf32, #tpu.memory_space<vmem>>, vector<1x128xf32>
      tpu.vector_store %arg17[%c0_35, %c0_36], %61 {strides = array<i32>} : memref<1x128xf32, #tpu.memory_space<vmem>>, vector<1x128xf32>,
    } else {
    }
    %c2_i32 = arith.constant 2 : i32
    %11 = arith.cmpi eq, %arg0, %c2_i32 : i32
    %12 = arith.extui %11 : i1 to i32
    %c0_i32_5 = arith.constant 0 : i32
    %13 = arith.cmpi ne, %12, %c0_i32_5 : i32
    scf.if %13 {
      %c0 = arith.constant 0 : index
      %c0_6 = arith.constant 0 : index
      %14 = vector.load %arg16[%c0, %c0_6] : memref<1x128xf32, #tpu.memory_space<vmem>>, vector<1x128xf32>
      %cst = arith.constant 3.125000e-02 : f32
      %15 = vector.broadcast %cst : f32 to vector<1x128xf32>
      %16 = arith.mulf %14, %15 : vector<1x128xf32>
      %c0_7 = arith.constant 0 : index
      %c0_8 = arith.constant 0 : index
      %17 = vector.load %arg17[%c0_7, %c0_8] : memref<1x128xf32, #tpu.memory_space<vmem>>, vector<1x128xf32>
      %cst_9 = arith.constant 3.125000e-02 : f32
      %18 = vector.broadcast %cst_9 : f32 to vector<1x128xf32>
      %19 = arith.mulf %17, %18 : vector<1x128xf32>
      %20 = arith.mulf %16, %16 : vector<1x128xf32>
      %21 = arith.subf %19, %20 : vector<1x128xf32>
      %c0_10 = arith.constant 0 : index
      %c0_11 = arith.constant 0 : index
      %22 = vector.load %arg9[%c0_10, %c0_11] : memref<1x128xf32, #tpu.memory_space<vmem>>, vector<1x128xf32>
      %cst_12 = arith.constant 9.99999974E-6 : f32
      %23 = vector.broadcast %cst_12 : f32 to vector<1x128xf32>
      %24 = arith.addf %21, %23 : vector<1x128xf32>
      %25 = math.rsqrt %24 : vector<1x128xf32>
      %26 = arith.mulf %22, %25 : vector<1x128xf32>
      %c0_13 = arith.constant 0 : index
      %c0_14 = arith.constant 0 : index
      %27 = vector.load %arg10[%c0_13, %c0_14] : memref<1x128xf32, #tpu.memory_space<vmem>>, vector<1x128xf32>
      %28 = arith.mulf %16, %26 : vector<1x128xf32>
      %29 = arith.subf %27, %28 : vector<1x128xf32>
      %30 = arith.index_cast %arg1 : i32 to index
      %c0_15 = arith.constant 0 : index
      %c0_16 = arith.constant 0 : index
      %31 = vector.load %arg13[%30, %c0_15, %c0_16] : memref<2x16x128xf32, #tpu.memory_space<vmem>>, vector<1x16x128xf32>
      %32 = vector.shape_cast %31 : vector<1x16x128xf32> to vector<16x128xf32>
      %33 = vector.broadcast %26 : vector<1x128xf32> to vector<16x128xf32>
      %34 = arith.mulf %32, %33 : vector<16x128xf32>
      %35 = vector.broadcast %29 : vector<1x128xf32> to vector<16x128xf32>
      %36 = arith.addf %34, %35 : vector<16x128xf32>
      %cst_17 = arith.constant 0.000000e+00 : f32
      %37 = vector.broadcast %cst_17 : f32 to vector<16x128xf32>
      %38 = arith.maximumf %36, %37 : vector<16x128xf32>
      %39 = arith.index_cast %arg1 : i32 to index
      %c0_18 = arith.constant 0 : index
      %c0_19 = arith.constant 0 : index
      %40 = vector.load %arg12[%39, %c0_18, %c0_19] : memref<2x16x128xf32, #tpu.memory_space<vmem>>, vector<1x16x128xf32>
      %41 = vector.shape_cast %40 : vector<1x16x128xf32> to vector<16x128xf32>
      %42 = arith.addf %41, %38 : vector<16x128xf32>
      %c0_20 = arith.constant 0 : index
      %c0_21 = arith.constant 0 : index
      %c0_22 = arith.constant 0 : index
      %43 = vector.load %arg11[%c0_20, %c0_21, %c0_22] : memref<1x16x128xf32, #tpu.memory_space<vmem>>, vector<1x16x128xf32>
      %44 = vector.shape_cast %43 : vector<1x16x128xf32> to vector<16x128xf32>
      %45 = vector.shape_cast %42 : vector<16x128xf32> to vector<1x16x128xf32>
      tpu.vector_store %arg11[%c0_20, %c0_21, %c0_22], %45 {strides = array<i32>} : memref<1x16x128xf32, #tpu.memory_space<vmem>>, vector<1x16x128xf32>,
    } else {
    }
    return
  }
  func.func @transform_0(%arg0: i32, %arg1: i32) -> (i32, i32, i32) {
    %c0_i32 = arith.constant 0 : i32
    %0 = arith.cmpi eq, %arg0, %c0_i32 : i32
    %c1_i32 = arith.constant 1 : i32
    %1 = arith.select %0, %arg1, %c1_i32 : i32
    %c0_i32_0 = arith.constant 0 : i32
    %c0_i32_1 = arith.constant 0 : i32
    %c0_i32_2 = arith.constant 0 : i32
    return %1, %c0_i32_0, %c0_i32_1 : i32, i32, i32
  }
  func.func @transform_1(%arg0: i32, %arg1: i32) -> (i32, i32) {
    %c0_i32 = arith.constant 0 : i32
    %c0_i32_0 = arith.constant 0 : i32
    %c0_i32_1 = arith.constant 0 : i32
    return %c0_i32, %c0_i32_0 : i32, i32
  }
  func.func @transform_2(%arg0: i32, %arg1: i32) -> (i32, i32) {
    %c0_i32 = arith.constant 0 : i32
    %c0_i32_0 = arith.constant 0 : i32
    %c0_i32_1 = arith.constant 0 : i32
    return %c0_i32, %c0_i32_0 : i32, i32
  }
  func.func @transform_3(%arg0: i32, %arg1: i32) -> (i32, i32) {
    %c0_i32 = arith.constant 0 : i32
    %c0_i32_0 = arith.constant 0 : i32
    %c0_i32_1 = arith.constant 0 : i32
    return %c0_i32, %c0_i32_0 : i32, i32
  }
  func.func @transform_4(%arg0: i32, %arg1: i32) -> (i32, i32) {
    %c0_i32 = arith.constant 0 : i32
    %c0_i32_0 = arith.constant 0 : i32
    %c0_i32_1 = arith.constant 0 : i32
    return %c0_i32, %c0_i32_0 : i32, i32
  }
  func.func @transform_5(%arg0: i32, %arg1: i32) -> (i32, i32) {
    %c0_i32 = arith.constant 0 : i32
    %c0_i32_0 = arith.constant 0 : i32
    %c0_i32_1 = arith.constant 0 : i32
    return %c0_i32, %c0_i32_0 : i32, i32
  }
  func.func @transform_6(%arg0: i32, %arg1: i32) -> (i32, i32) {
    %c0_i32 = arith.constant 0 : i32
    %c0_i32_0 = arith.constant 0 : i32
    %c0_i32_1 = arith.constant 0 : i32
    return %c0_i32, %c0_i32_0 : i32, i32
  }
  func.func @transform_7(%arg0: i32, %arg1: i32) -> (i32, i32) {
    %c0_i32 = arith.constant 0 : i32
    %c0_i32_0 = arith.constant 0 : i32
    %c0_i32_1 = arith.constant 0 : i32
    return %c0_i32, %c0_i32_0 : i32, i32
  }
  func.func @transform_8(%arg0: i32, %arg1: i32) -> (i32, i32) {
    %c0_i32 = arith.constant 0 : i32
    %c0_i32_0 = arith.constant 0 : i32
    %c0_i32_1 = arith.constant 0 : i32
    return %c0_i32, %c0_i32_0 : i32, i32
  }
  func.func @transform_9(%arg0: i32, %arg1: i32) -> (i32, i32, i32) {
    %c2_i32 = arith.constant 2 : i32
    %0 = arith.cmpi eq, %arg0, %c2_i32 : i32
    %c0_i32 = arith.constant 0 : i32
    %1 = arith.select %0, %arg1, %c0_i32 : i32
    %c0_i32_0 = arith.constant 0 : i32
    %c0_i32_1 = arith.constant 0 : i32
    %c0_i32_2 = arith.constant 0 : i32
    return %1, %c0_i32_0, %c0_i32_1 : i32, i32, i32
  }
}

</mosaic_0001>

<bundles_post_ra>
// kernel: resblock_forward.1
= control target key start
LH: loop header
LB: loop body
LE: loop exit
PB: predicated region body
PF: predicated region fallthrough
CT: control target
= control target key end

     0   :  { %14 = vsyncpa [#allocation9], 0  ;;  %s1893_s0 = inlined_call_operand.vmem [shape: f32[2,20,128], index: 0, kind: input, shape index: {}]   ;;  %s1894_s1 = inlined_call_operand.hbm [shape: f32[640,128], index: 1, kind: input, shape index: {}]   ;;  %s1895_s2 = inlined_call_operand.vmem [shape: f32[1,128], index: 2, kind: input, shape index: {}]   ;;  %s1896_s3 = inlined_call_operand.vmem [shape: f32[1,128], index: 3, kind: input, shape index: {}]   ;;  %s1897_s4 = inlined_call_operand.vmem [shape: f32[1,128], index: 4, kind: input, shape index: {}]   ;;  %s1898_s5 = inlined_call_operand.hbm [shape: f32[128,128], index: 5, kind: input, shape index: {}]   ;;  %s1899_s6 = inlined_call_operand.vmem [shape: f32[1,128], index: 6, kind: input, shape index: {}]   ;;  %s1900_s7 = inlined_call_operand.vmem [shape: f32[1,128], index: 7, kind: input, shape index: {}]   ;;  %s1901_s8 = inlined_call_operand.vmem [shape: f32[1,128], index: 8, kind: input, shape index: {}]   ;;  %s1902_s9 = inlined_call_operand.hbm [shape: f32[2,16,128], index: 9, kind: output, shape index: {}]  }
   0x1   :  { %15 = vsyncpa [#allocation12], 0 }
   0x2   :  { %16 = vsyncpa [#allocation10], 0 }
   0x3   :  { %18 = vsyncpa [#allocation10 + $0x1], 0  ;;  %s1637_s30 = smov 0   ;;  %s1639_s10 = smov 0  }
   0x4   :  { %s1641_s11 = smov 0   ;;  %s1643_s12 = smov 0  }
   0x5   :  { %s1645_s13 = smov 0   ;;  %s1647_s14 = smov 0  }
   0x6   :  { %s1649_s15 = smov 0   ;;  %s1651_s16 = smov 0  }
   0x7 LB: > { %1907 = sst [smem:[#allocation17_spill]] %s1569_s14  ;;  %s1116_s17 = sadd.s32 4294967295, %s1577_s16   ;;  %s1577_s16 = sphi %s1651_s16, %s24_s16   ;;  %s1573_s15 = sphi %s1649_s15, %s1920_s15   ;;  %s1569_s14 = sphi %s1647_s14, %s1919_s14   ;;  %s1565_s13 = sphi %s1645_s13, %s1918_s13   ;;  %s1561_s12 = sphi %s1643_s12, %s1917_s12   ;;  %s1557_s11 = sphi %s1641_s11, %s1923_s11   ;;  %s1553_s10 = sphi %s1639_s10, %s1922_s10   ;;  %s1549_s30 = sphi %s1637_s30, %s1921_s30  }
   0x8   : > { %1908 = sst [smem:[#allocation18_spill]] %s1573_s15  ;;  %s1117_s18 = sadd.s32 4294967294, %s1577_s16  }
   0x9   : > { %s33_s19 = sadd.s32 1, %s1569_s14  ;;  %s36_s20 = sadd.s32 1, %s1573_s15 }
   0xa   : > { %p34_p0 = scmp.ge.s32.totalorder %s33_s19, 2  ;;  %p238_p1 = scmp.eq.s32.totalorder %s1573_s15, 2 }
   0xb   : > { %s245_s21 = sadd.s32 1, %s1557_s11  ;;  %p255_p2 = scmp.ne.s32.totalorder %s1557_s11, %s1553_s10 }
   0xc   : > { %s1925_s19 = smov (%p34_p0, %s33_s19), 0  ;;  %s1927_s20 = smov (!%p34_p0, %s36_s20), %s1573_s15 }
   0xd   : > { %1909 = sst [smem:[#allocation19_spill]] %s1925_s19  ;;  %p38_p3 = scmp.ge.s32.totalorder %s1927_s20, 3 }
   0xe   : > { %s239_s22 = scalar_select %p238_p1, %s1569_s14, 0 }
   0xf   : > { %p256_p4 = scmp.eq.s32.totalorder %s1116_s17, 5  ;;  %p261_p5 = scmp.ne.s32.totalorder %s1553_s10, %s1549_s30 }
  0x10   : > { %p262_p6 = scmp.eq.s32.totalorder %s1117_s18, 5  ;;  %s1929_s20 = smov (%p38_p3, %s1927_s20), 0 }
  0x11   : > { %1910 = sst [smem:[#allocation20_spill]] %s1929_s20  ;;  %p1693_p7 = por %p256_p4, %p255_p2 }
  0x12   : > { %p1697_p8 = por %p262_p6, %p261_p5  ;;  %p240_p9 = scmp.eq.s32.totalorder %s1929_s20, 2 }
  0x13   : > { %p1118_p10 = scmp.ge.s32.totalorder %s1577_s16, 1  ;;  %p269_p11 = scmp.lt.s32.totalorder %s1577_s16, 7 }
  0x14   : > { %s1912_s24 = scalar_select %p1697_p8, 1, 0 }
  0x15   : > { %s241_s25 = scalar_select %p240_p9, %s1925_s19, 0 }
  0x16   : > { %p1705_p12 = pnand %p1118_p10, %p269_p11  ;;  %p1709_p13 = scmp.eq.s32.totalorder %s1116_s17, 0 }
  0x17   : > { %s242_s28 = ssub.s32 %s239_s22, %s241_s25  ;;  %s1579_s29 = smov [#allocation8]  }
  0x18   : > { %p243_p0 = scmp.eq.s32.totalorder %s242_s28, 0  ;;  %p1334_p1 = pneg %p1705_p12 }
  0x19   : > { %s281_s18 = sshll.u32 %s1579_s29, 4  ;;  %s1580_s17 = smov [#allocation11]   ;;  %s282_s18 = int_to_ptr.vmem [resolvable:$true] %s281_s18 }
  0x1a   : > { %s1716_s20 = scalar_select %p243_p0, %s1557_s11, %s245_s21  }
  0x1b   : > { %p1720_p2 = pnand %p1709_p13, %p1334_p1  ;;  %s303_s15 = sshll.u32 %s1580_s17, 4  ;;  %s304_s15 = int_to_ptr.vmem [resolvable:$true] %s303_s15 }
  0x1c   : > { %s1436_s22 = scalar_lea.vmem %s282_s18, 10240  ;;  %p1444_p9 = scmp.lt.s32.totalorder %s282_s18, %s282_s18 }
  0x1d   : > { %p1427_p3 = pneg %p1720_p2  ;;  %p1437_p4 = scmp.ne.s32.totalorder %s282_s18, %s1436_s22 }
  0x1e   : > { %p1445_p10 = scmp.lt.s32.totalorder %s1436_s22, %s1436_s22 }
  0x1f   : > { %p1439_p5 = pnand %p1437_p4, %p1427_p3 }
  0x20   : > { %p1446_p11 = por %p1445_p10, %p1444_p9 }
  0x21   : > { %p1440_p6 = pneg %p1439_p5 }
  0x23   : > { %p1447_p0 = pnand %p1446_p11, %p1440_p6 }
  0x25   : > { %1450 = shalt.err (!%p1447_p0)
}
  0x26   : > { %s1581_s21 = smov 128   ;;  %s1582_s25 = smov 8  }
  0x27   : > { %1337 = dma.hbm_to_vmem [thread:$0]  (!%p1720_p2), %s1894_s1, 10240, %s282_s18, [#allocation9], %s1581_s21, %s1581_s21, %s1582_s25  }
  0x28   : > { %s1462_s17 = scalar_lea.vmem %s304_s15, 2048  ;;  %p1470_p8 = scmp.lt.s32.totalorder %s304_s15, %s304_s15 }
  0x29   : > { %p1463_p1 = scmp.ne.s32.totalorder %s304_s15, %s1462_s17  ;;  %p1471_p9 = scmp.lt.s32.totalorder %s1462_s17, %s1462_s17 }
  0x2b   : > { %p1465_p4 = pnand %p1463_p1, %p1427_p3  ;;  %p1472_p6 = por %p1471_p9, %p1470_p8 }
  0x2d   : > { %p1466_p5 = pneg %p1465_p4 }
  0x2f   : > { %p1473_p10 = pnand %p1472_p6, %p1466_p5 }
  0x31   : > { %1476 = shalt.err (!%p1473_p10)
}
  0x32   : > { %1340 = dma.hbm_to_vmem [thread:$0]  (!%p1720_p2), %s1898_s5, 2048, %s304_s15, [#allocation12], %s1581_s21, %s1581_s21, %s1582_s25  }
  0x33   : > { %340 = sbr.rel (%p1705_p12) target bundleno = 693 (0x2b5), region = 56 }
  0x38   : > { %1536 = dma.done.wait (%p1709_p13), [#allocation9], 10240  }
  0x39   : > { %1538 = vsyncadd (%p1709_p13), [#allocation9], 4294957056 }
  0x3a   : > { %1540 = dma.done.wait (%p1709_p13), [#allocation12], 2048  }
  0x3b   : > { %1542 = vsyncadd (%p1709_p13), [#allocation12], 4294965248  ;;  %s379_s14 = sand.u32 1, %s1553_s10   ;;  %p382_p8 = scmp.eq.s32.totalorder %s1565_s13, 0 }
  0x3c   : > { %s1125_s15 = sshll.u32 %s379_s14, 4  ;;  %p394_p12 = scmp.eq.s32.totalorder %s1561_s12, 0 }
  0x3d   : > { %s383_s19 = scalar_select %p382_p8, %s1561_s12, 1 }
  0x3e   : > { %p395_p2 = pnand %p394_p12, %p382_p8  ;;  %s1763_s25 = scalar_lea.vmem [#allocation13], %s1125_s15 }
  0x3f   : > { %p384_p3 = scmp.lt.s32.totalorder %s383_s19, 1 }
  0x40   : > { %398 = sbr.rel (%p395_p2) target bundleno = 72 (0x48), region = 68 }
  0x41   : > { %s1931_s19 = smov (!%p384_p3, %s383_s19), 1 }
  0x42   : > { %s1323_s26 = smul.u32 24, %s1931_s19 }
  0x44   : > { %s1761_s27 = scalar_lea.vmem %s1893_s0, %s1323_s26 }
  0x45   : > { %v1583_v0 = vmov 0.0  }
  0x46   : > { %399 = vst [vmem:[#allocation4] sm:$0x1] %v1583_v0  ;;  %400 = vst [vmem:[#allocation5] sm:$0x1] %v1583_v0 }
  0x47   : > { %401 = vst [vmem:[#allocation6] sm:$0x1] %v1583_v0  ;;  %402 = vst [vmem:[#allocation7] sm:$0x1] %v1583_v0 }
  0x48 PF: > { %p1127_p13 = scmp.ne.s32.totalorder %s1565_s13, 0 }
  0x49   : > { %s1129_s17 = sshll.u32 (!%p1127_p13), %s1561_s12, 4 }
  0x4a   : > { %405 = sbr.rel (%p1127_p13) target bundleno = 362 (0x16a), region = 72  ;;  %s760_s22 = scalar_lea.vmem (!%p1127_p13), [#allocation2], %s1129_s17 }
  0x4f   : > { %v478_v1 = vld [vmem:[#allocation8 + $0xf8] sm:$0xff]  ;;  %v477_v3 = vld [vmem:[#allocation8 + $0xf0] sm:$0xff]  ;;  %v476_v7 = vld [vmem:[#allocation8 + $0xe8] sm:$0xff]  ;;  %vm409_vm0 = vcmask 1047556   ;;  %vm415_vm1 = vcmask 1046528   ;;  %vm431_vm2 = vcmask 1044480  }
  0x50   : > { %v462_v2 = vld [vmem:[#allocation8 + $0x78] sm:$0xff]  ;;  %1141 = vmatprep.subr.mxu0 %v478_v1  ;;  %v461_v5 = vld [vmem:[#allocation8 + $0x70] sm:$0xff]  ;;  %v460_v9 = vld [vmem:[#allocation8 + $0x68] sm:$0xff]  ;;  %vm423_vm3 = vcmask 1045504   ;;  %vm439_vm4 = vcmask 1043456  }
  0x51   : > { %v510_v4 = vld [vmem:[#allocation8 + $0x1f8] sm:$0xff]  ;;  %1142 = vmatpush3.msra.mxu0 %v462_v2  ;;  %v509_v8 = vld [vmem:[#allocation8 + $0x1f0] sm:$0xff]  ;;  %v508_v11 = vld [vmem:[#allocation8 + $0x1e8] sm:$0xff] }
  0x52   : > { %v494_v6 = vld [vmem:[#allocation8 + $0x178] sm:$0xff]  ;;  %1179 = vmatprep.subr.mxu1 %v510_v4  ;;  %1143 = vmatprep.subr.mxu0 %v477_v3  ;;  %v493_v10 = vld [vmem:[#allocation8 + $0x170] sm:$0xff]  ;;  %v475_v12 = vld [vmem:[#allocation8 + $0xe0] sm:$0xff] }
  0x53   : > { %1180 = vmatpush3.msra.mxu1 %v494_v6  ;;  %1144 = vmatpush3.msra.mxu0 %v461_v5  ;;  %v492_v13 = vld [vmem:[#allocation8 + $0x168] sm:$0xff]  ;;  %v459_v14 = vld [vmem:[#allocation8 + $0x60] sm:$0xff]  ;;  %v474_v16 = vld [vmem:[#allocation8 + $0xd8] sm:$0xff] }
  0x54   : > { %1181 = vmatprep.subr.mxu1 %v509_v8  ;;  %1145 = vmatprep.subr.mxu0 %v476_v7  ;;  %v507_v15 = vld [vmem:[#allocation8 + $0x1e0] sm:$0xff]  ;;  %v458_v18 = vld [vmem:[#allocation8 + $0x58] sm:$0xff]  ;;  %v473_v20 = vld [vmem:[#allocation8 + $0xd0] sm:$0xff] }
  0x55   : > { %1182 = vmatpush3.msra.mxu1 %v493_v10  ;;  %1146 = vmatpush3.msra.mxu0 %v460_v9  ;;  %v491_v17 = vld [vmem:[#allocation8 + $0x160] sm:$0xff]  ;;  %v506_v19 = vld [vmem:[#allocation8 + $0x1d8] sm:$0xff]  ;;  %v457_v22 = vld [vmem:[#allocation8 + $0x50] sm:$0xff] }
  0x56   : > { %1183 = vmatprep.subr.mxu1 %v508_v11  ;;  %1147 = vmatprep.subr.mxu0 %v475_v12  ;;  %v490_v21 = vld [vmem:[#allocation8 + $0x158] sm:$0xff]  ;;  %v505_v23 = vld [vmem:[#allocation8 + $0x1d0] sm:$0xff]  ;;  %v472_v24 = vld [vmem:[#allocation8 + $0xc8] sm:$0xff] }
  0x57   : > { %1184 = vmatpush3.msra.mxu1 %v492_v13  ;;  %1148 = vmatpush3.msra.mxu0 %v459_v14  ;;  %v489_v25 = vld [vmem:[#allocation8 + $0x150] sm:$0xff]  ;;  %v456_v26 = vld [vmem:[#allocation8 + $0x48] sm:$0xff]  ;;  %v471_v28 = vld [vmem:[#allocation8 + $0xc0] sm:$0xff] }
  0x58   : > { %1185 = vmatprep.subr.mxu1 %v507_v15  ;;  %1149 = vmatprep.subr.mxu0 %v474_v16  ;;  %v504_v27 = vld [vmem:[#allocation8 + $0x1c8] sm:$0xff]  ;;  %v455_v30 = vld [vmem:[#allocation8 + $0x40] sm:$0xff]  ;;  %v470_v32 = vld [vmem:[#allocation8 + $0xb8] sm:$0xff] }
  0x59   : > { %1186 = vmatpush3.msra.mxu1 %v491_v17  ;;  %1150 = vmatpush3.msra.mxu0 %v458_v18  ;;  %v488_v29 = vld [vmem:[#allocation8 + $0x148] sm:$0xff]  ;;  %v503_v31 = vld [vmem:[#allocation8 + $0x1c0] sm:$0xff]  ;;  %v454_v34 = vld [vmem:[#allocation8 + $0x38] sm:$0xff] }
  0x5a   : > { %1187 = vmatprep.subr.mxu1 %v506_v19  ;;  %1151 = vmatprep.subr.mxu0 %v473_v20  ;;  %v487_v33 = vld [vmem:[#allocation8 + $0x140] sm:$0xff]  ;;  %v502_v35 = vld [vmem:[#allocation8 + $0x1b8] sm:$0xff]  ;;  %v469_v36 = vld [vmem:[#allocation8 + $0xb0] sm:$0xff] }
  0x5b   : > { %1188 = vmatpush3.msra.mxu1 %v490_v21  ;;  %1152 = vmatpush3.msra.mxu0 %v457_v22  ;;  %v486_v37 = vld [vmem:[#allocation8 + $0x138] sm:$0xff]  ;;  %v453_v38 = vld [vmem:[#allocation8 + $0x30] sm:$0xff]  ;;  %v468_v40 = vld [vmem:[#allocation8 + $0xa8] sm:$0xff] }
  0x5c   : > { %1189 = vmatprep.subr.mxu1 %v505_v23  ;;  %1153 = vmatprep.subr.mxu0 %v472_v24  ;;  %v501_v39 = vld [vmem:[#allocation8 + $0x1b0] sm:$0xff]  ;;  %v452_v42 = vld [vmem:[#allocation8 + $0x28] sm:$0xff]  ;;  %v467_v44 = vld [vmem:[#allocation8 + $0xa0] sm:$0xff] }
  0x5d   : > { %1190 = vmatpush3.msra.mxu1 %v489_v25  ;;  %1154 = vmatpush3.msra.mxu0 %v456_v26  ;;  %v485_v41 = vld [vmem:[#allocation8 + $0x130] sm:$0xff]  ;;  %v500_v43 = vld [vmem:[#allocation8 + $0x1a8] sm:$0xff]  ;;  %v451_v45 = vld [vmem:[#allocation8 + $0x20] sm:$0xff] }
  0x5e   : > { %1191 = vmatprep.subr.mxu1 %v504_v27  ;;  %1155 = vmatprep.subr.mxu0 %v471_v28  ;;  %v484_v46 = vld [vmem:[#allocation8 + $0x128] sm:$0xff]  ;;  %v499_v47 = vld [vmem:[#allocation8 + $0x1a0] sm:$0xff]  ;;  %v466_v50 = vld [vmem:[#allocation8 + $0x98] sm:$0xff] }
  0x5f   : > { %1192 = vmatpush3.msra.mxu1 %v488_v29  ;;  %1156 = vmatpush3.msra.mxu0 %v455_v30  ;;  %v1767_v48 = vld [vmem:[%s1761_s27] sm:$0xff]  ;;  %v1770_v49 = vld [vmem:[%s1761_s27 + $0x8] sm:$0xff]  ;;  %v465_v55 = vld [vmem:[#allocation8 + $0x90] sm:$0xff] }
  0x60   : > { %1193 = vmatprep.subr.mxu1 %v503_v31  ;;  %1157 = vmatprep.subr.mxu0 %v470_v32  ;;  %v483_v51 = vld [vmem:[#allocation8 + $0x120] sm:$0xff]  ;;  %v450_v52 = vld [vmem:[#allocation8 + $0x18] sm:$0xff]  ;;  %v410_v54 = vrot.slane %v1767_v48, 4  ;;  %v416_v57 = vrot.slane %v1767_v48, 1  ;;  %v417_v58 = vrot.slane %v1770_v49, 1  ;;  %v449_v59 = vld [vmem:[#allocation8 + $0x10] sm:$0xff] }
  0x61   : > { %1194 = vmatpush3.msra.mxu1 %v487_v33  ;;  %1158 = vmatpush3.msra.mxu0 %v454_v34  ;;  %v498_v53 = vld [vmem:[#allocation8 + $0x198] sm:$0xff]  ;;  %v497_v60 = vld [vmem:[#allocation8 + $0x190] sm:$0xff]  ;;  %v464_v61 = vld [vmem:[#allocation8 + $0x88] sm:$0xff]  ;;  %v432_v5 = vrot.slane %v1767_v48, 3  ;;  %v433_v6 = vrot.slane %v1770_v49, 3  ;;  %v424_v9 = vrot.slane %v1767_v48, 2 }
  0x62   : > { %1195 = vmatprep.subr.mxu1 %v502_v35  ;;  %1159 = vmatprep.subr.mxu0 %v469_v36  ;;  %v482_v56 = vld [vmem:[#allocation8 + $0x118] sm:$0xff]  ;;  %v481_v62 = vld [vmem:[#allocation8 + $0x110] sm:$0xff]  ;;  %v408_v63 = vld [vmem:[%s1761_s27 + $0x10] sm:$0xf]  ;;  %v418_v4 = vsel %vm415_vm1, %v416_v57, %v417_v58  ;;  %v425_v10 = vrot.slane %v1770_v49, 2  ;;  %v441_v21 = vrot.slane %v1770_v49, 4 }
  0x63   : > { %1196 = vmatpush3.msra.mxu1 %v486_v37  ;;  %1160 = vmatpush3.msra.mxu0 %v453_v38  ;;  %v448_v0 = vld [vmem:[#allocation8 + $0x8] sm:$0xff]  ;;  %v1778_v2 = vsel %vm409_vm0, %v410_v54, %v408_v63  ;;  %v463_v3 = vld [vmem:[#allocation8 + $0x80] sm:$0xff]  ;;  %v526_v13 = vld [vmem:[#allocation8 + $0x278] sm:$0xff]  ;;  %v434_v15 = vsel %vm431_vm2, %v432_v5, %v433_v6 }
  0x64   : > { %1197 = vmatprep.subr.mxu1 %v501_v39  ;;  %1161 = vmatprep.subr.mxu0 %v468_v40  ;;  %v496_v1 = vld [vmem:[#allocation8 + $0x188] sm:$0xff]  ;;  %v447_v7 = vld [vmem:[#allocation8] sm:$0xff]  ;;  %v419_v12 = vrot.slane %v1778_v2, 1  ;;  %v435_v16 = vrot.slane %v1778_v2, 3  ;;  %v426_v17 = vsel %vm423_vm3, %v424_v9, %v425_v10  ;;  %v525_v18 = vld [vmem:[#allocation8 + $0x270] sm:$0xff]  ;;  %v427_v19 = vrot.slane %v1778_v2, 2 }
  0x65   : > { %1198 = vmatpush3.msra.mxu1 %v485_v41  ;;  %1162 = vmatpush3.msra.mxu0 %v452_v42  ;;  %v480_v8 = vld [vmem:[#allocation8 + $0x108] sm:$0xff]  ;;  %v495_v11 = vld [vmem:[#allocation8 + $0x180] sm:$0xff]  ;;  %v442_v26 = vsel %vm439_vm4, %v410_v54, %v441_v21  ;;  %v522_v27 = vld [vmem:[#allocation8 + $0x258] sm:$0xff]  ;;  %v443_v38 = vrot.slane %v1778_v2, 4 }
  0x66   : > { %1199 = vmatprep.subr.mxu1 %v500_v43  ;;  %1163 = vmatprep.subr.mxu0 %v467_v44  ;;  %v479_v14 = vld [vmem:[#allocation8 + $0x100] sm:$0xff]  ;;  %v420_v20 = vsel %vm415_vm1, %v417_v58, %v419_v12  ;;  %v524_v22 = vld [vmem:[#allocation8 + $0x268] sm:$0xff]  ;;  %v436_v23 = vsel %vm431_vm2, %v433_v6, %v435_v16  ;;  %v428_v25 = vsel %vm423_vm3, %v425_v10, %v427_v19  ;;  %v521_v28 = vld [vmem:[#allocation8 + $0x250] sm:$0xff] }
  0x67   : > { %1200 = vmatpush3.msra.mxu1 %v484_v46  ;;  %1164 = vmatpush3.msra.mxu0 %v451_v45  ;;  %v523_v24 = vld [vmem:[#allocation8 + $0x260] sm:$0xff]  ;;  %v520_v29 = vld [vmem:[#allocation8 + $0x248] sm:$0xff]  ;;  %v518_v31 = vld [vmem:[#allocation8 + $0x238] sm:$0xff]  ;;  %v444_v40 = vsel %vm439_vm4, %v441_v21, %v443_v38 }
  0x68   : > { %1201 = vmatprep.subr.mxu1 %v499_v47  ;;  %1165 = vmatprep.subr.mxu0 %v466_v50  ;;  %v519_v30 = vld [vmem:[#allocation8 + $0x240] sm:$0xff]  ;;  %v517_v32 = vld [vmem:[#allocation8 + $0x230] sm:$0xff]  ;;  %v516_v33 = vld [vmem:[#allocation8 + $0x228] sm:$0xff] }
  0x69   : > { %1202 = vmatpush3.msra.mxu1 %v483_v51  ;;  %1166 = vmatpush3.msra.mxu0 %v450_v52  ;;  %v515_v34 = vld [vmem:[#allocation8 + $0x220] sm:$0xff]  ;;  %v514_v35 = vld [vmem:[#allocation8 + $0x218] sm:$0xff]  ;;  %v513_v36 = vld [vmem:[#allocation8 + $0x210] sm:$0xff] }
  0x6a   : > { %1203 = vmatprep.subr.mxu1 %v498_v53  ;;  %1167 = vmatprep.subr.mxu0 %v465_v55  ;;  %v512_v37 = vld [vmem:[#allocation8 + $0x208] sm:$0xff]  ;;  %v511_v39 = vld [vmem:[#allocation8 + $0x200] sm:$0xff]  ;;  %v1128_v50 = vld [vmem:[%s1895_s2] ss:$0 sm:$0xff] }
  0x6b   : > { %1204 = vmatpush3.msra.mxu1 %v482_v56  ;;  %1168 = vmatpush3.msra.mxu0 %v449_v59 }
  0x6c   : > { %1205 = vmatprep.subr.mxu1 %v497_v60  ;;  %1169 = vmatprep.subr.mxu0 %v464_v61 }
  0x6d   : > { %1206 = vmatpush3.msra.mxu1 %v481_v62  ;;  %1170 = vmatpush3.msra.mxu0 %v448_v0 }
  0x6e   : > { %1207 = vmatprep.subr.mxu1 %v496_v1  ;;  %1171 = vmatprep.subr.mxu0 %v463_v3 }
  0x6f   : > { %598 = vmatprep.mubr.f32.mxu0 %v418_v4  ;;  %1172 = vmatpush3.msra.mxu0 %v447_v7 }
  0x70   : > { %1208 = vmatpush3.msra.mxu1 %v480_v8  ;;  %599 = vmatmul.mubr.f32.vlgmr.msra.gmra.mxu0 %v1767_v48 }
  0x71   : > { %1209 = vmatprep.subr.mxu1 %v495_v11  ;;  %1253 = vmatprep.subr.mxu0 %v526_v13  ;;  %v763_v11 = vld [vmem:[#allocation4] sm:$0x1] }
  0x72   : > { %1210 = vmatpush3.msra.mxu1 %v479_v14  ;;  %673 = vmatprep.mubr.f32.mxu1 %v434_v15  ;;  %v773_v14 = vld [vmem:[#allocation5] sm:$0x1] }
  0x73   : > { %1254 = vmatpush3.msra.mxu0 %v526_v13  ;;  %674 = vmatmul.mubr.f32.vlgmr.msra.gmra.mxu1 %v426_v17 }
  0x74   : > { %1255 = vmatprep.subr.mxu0 %v525_v18  ;;  %603 = vmatprep.mubr.f32.mxu0 %v420_v20 }
  0x75   : > { %1256 = vmatpush3.msra.mxu0 %v525_v18  ;;  %678 = vmatprep.mubr.f32.mxu1 %v436_v23 }
  0x76   : > { %1257 = vmatprep.subr.mxu0 %v524_v22  ;;  %604 = vmatmul.mubr.f32.gmra.mxu0 %v1770_v49 }
  0x77   : > { %1258 = vmatpush3.msra.mxu0 %v524_v22  ;;  %679 = vmatmul.mubr.f32.gmra.mxu1 %v428_v25 }
  0x78   : > { %1259 = vmatprep.subr.mxu0 %v523_v24  ;;  %1285 = vmatprep.mubr.f32.mxu0 %v442_v26 }
  0x79   : > { %1260 = vmatpush3.msra.mxu0 %v523_v24 }
  0x7a   : > { %1261 = vmatprep.subr.mxu0 %v522_v27 }
  0x7b   : > { %1262 = vmatpush3.msra.mxu0 %v522_v27 }
  0x7c   : > { %1263 = vmatprep.subr.mxu0 %v521_v28 }
  0x7d   : > { %1264 = vmatpush3.msra.mxu0 %v521_v28 }
  0x7e   : > { %1265 = vmatprep.subr.mxu0 %v520_v29 }
  0x7f   : > { %1266 = vmatpush3.msra.mxu0 %v520_v29 }
  0x80   : > { %1267 = vmatprep.subr.mxu0 %v519_v30 }
  0x81   : > { %1268 = vmatpush3.msra.mxu0 %v519_v30 }
  0x82   : > { %1269 = vmatprep.subr.mxu0 %v518_v31 }
  0x83   : > { %1270 = vmatpush3.msra.mxu0 %v518_v31 }
  0x84   : > { %1271 = vmatprep.subr.mxu0 %v517_v32 }
  0x85   : > { %1272 = vmatpush3.msra.mxu0 %v517_v32 }
  0x86   : > { %1273 = vmatprep.subr.mxu0 %v516_v33 }
  0x87   : > { %1274 = vmatpush3.msra.mxu0 %v516_v33 }
  0x88   : > { %1275 = vmatprep.subr.mxu0 %v515_v34 }
  0x89   : > { %1276 = vmatpush3.msra.mxu0 %v515_v34 }
  0x8a   : > { %1277 = vmatprep.subr.mxu0 %v514_v35 }
  0x8b   : > { %1278 = vmatpush3.msra.mxu0 %v514_v35 }
  0x8c   : > { %1279 = vmatprep.subr.mxu0 %v513_v36 }
  0x8d   : > { %1280 = vmatpush3.msra.mxu0 %v513_v36 }
  0x8e   : > { %1281 = vmatprep.subr.mxu0 %v512_v37 }
  0x8f   : > { %1282 = vmatpush3.msra.mxu0 %v512_v37 }
  0x90   : > { %1283 = vmatprep.subr.mxu0 %v511_v39 }
  0x91   : > { %1284 = vmatpush3.msra.mxu0 %v511_v39 }
  0x92   : > { %1286 = vmatmul.mubr.f32.vlgmr.msra.gmra.mxu0 %v444_v40 }
 0x130   : > { %v1173_v41 = vpop.f32.mrf.mxu0 }
 0x132   : > { %v1174_v42 = vpop.f32.mrf.mxu0 }
 0x133   : > { %v1211_v43 = vpop.f32.mrf.mxu1  ;;  %v1175_v51 = vadd.f32 %v1174_v42, %v1173_v41 }
 0x135   : > { %v1212_v45 = vpop.f32.mrf.mxu1  ;;  %v601_v54 = vadd.f32 %v1175_v51, %v1128_v50 }
 0x136   : > { %v1176_v44 = vpop.f32.mrf.mxu0  ;;  %v1213_v55 = vadd.f32 %v1212_v45, %v1211_v43 }
 0x137   : > { %v1214_v47 = vpop.f32.mrf.mxu1 }
 0x138   : > { %v1177_v46 = vpop.f32.mrf.mxu0  ;;  %v676_v59 = vadd.f32 %v1213_v55, %v601_v54 }
 0x139   : > { %v1178_v48 = vadd.f32 %v1177_v46, %v1176_v44  ;;  %v1215_v49 = vpop.f32.mrf.mxu1 }
 0x13a   : > { %v1216_v53 = vadd.f32 %v1215_v49, %v1214_v47 }
 0x13b   : > { %v606_v52 = vadd.f32 %v1178_v48, %v1128_v50 }
 0x13d   : > { %v681_v56 = vadd.f32 %v1216_v53, %v606_v52 }
 0x152   : > { %v1287_v57 = vpop.f32.mrf.mxu0 }
 0x153   : > { %v756_v58 = vadd.f32 %v1287_v57, %v681_v56 }
 0x154   : > { %v750_v60 = vpop.f32.mrf.mxu0 }
 0x155   : > { %762 = vst [vmem:[%s760_s22 + $0x8] sm:$0xff] %v756_v58  ;;  %v751_v61 = vadd.f32 %v750_v60, %v676_v59  ;;  %v775_v62 = vmul.f32 %v756_v58, %v756_v58 }
 0x157   : > { %761 = vst [vmem:[%s760_s22] sm:$0xff] %v751_v61  ;;  %v764_v63 = vadd.f32 %v756_v58, %v751_v61  ;;  %v774_v0 = vmul.f32 %v751_v61, %v751_v61 }
 0x159   : > { %v765_v1 = vrot.slane %v764_v63, 4  ;;  %v776_v2 = vadd.f32 %v775_v62, %v774_v0 }
 0x15b   : > { %v766_v3 = vadd.f32 %v765_v1, %v764_v63  ;;  %v777_v4 = vrot.slane %v776_v2, 4 }
 0x15d   : > { %v767_v5 = vrot.slane %v766_v3, 2  ;;  %v778_v6 = vadd.f32 %v777_v4, %v776_v2 }
 0x15f   : > { %v768_v7 = vadd.f32 %v767_v5, %v766_v3  ;;  %v779_v8 = vrot.slane %v778_v6, 2 }
 0x161   : > { %v769_v9 = vrot.slane %v768_v7, 1  ;;  %v780_v10 = vadd.f32 %v779_v8, %v778_v6 }
 0x163   : > { %v770_v12 = vadd.f32 %v769_v9, %v768_v7  ;;  %v781_v13 = vrot.slane %v780_v10, 1 }
 0x165   : > { %v771_v15 = vadd.f32 %v770_v12, %v763_v11  ;;  %v782_v16 = vadd.f32 %v781_v13, %v780_v10 }
 0x167   : > { %772 = vst [vmem:[#allocation4] sm:$0x1] %v771_v15  ;;  %v783_v17 = vadd.f32 %v782_v16, %v773_v14 }
 0x169   : > { %784 = vst [vmem:[#allocation5] sm:$0x1] %v783_v17 }
 0x16a PF: > { %p1130_p11 = scmp.ne.s32.totalorder %s1565_s13, 1 }
 0x16b   : > { %s1131_s15 = sshll.u32 (!%p1130_p11), %s1561_s12, 4 }
 0x16c   : > { %788 = sbr.rel (%p1130_p11) target bundleno = 622 (0x26e), region = 76  ;;  %s803_s27 = scalar_lea.vmem (!%p1130_p11), [#allocation2], %s1131_s15 }
 0x16d   : > { %s924_s17 = scalar_lea.vmem (!%p1130_p11), [#allocation3], %s1131_s15 }
 0x171   : > { %v841_v18 = vld [vmem:[#allocation11 + $0x78] sm:$0xff]  ;;  %v840_v19 = vld [vmem:[#allocation11 + $0x70] sm:$0xff]  ;;  %v839_v20 = vld [vmem:[#allocation11 + $0x68] sm:$0xff]  ;;  %v807_v36 = vlaneseq }
 0x172   : > { %1288 = vmatprep.subr.mxu0 %v841_v18  ;;  %v838_v21 = vld [vmem:[#allocation11 + $0x60] sm:$0xff]  ;;  %v789_v22 = vld [vmem:[#allocation4] sm:$0x1]  ;;  %v791_v23 = vld [vmem:[#allocation5] sm:$0x1] }
 0x173   : > { %1289 = vmatpush3.msra.mxu0 %v841_v18  ;;  %v837_v24 = vld [vmem:[#allocation11 + $0x58] sm:$0xff]  ;;  %v790_v25 = vmul.f32 0.03125, %v789_v22  ;;  %v792_v26 = vmul.f32 0.03125, %v791_v23  ;;  %v836_v27 = vld [vmem:[#allocation11 + $0x50] sm:$0xff]  ;;  %v835_v29 = vld [vmem:[#allocation11 + $0x48] sm:$0xff]  ;;  %v808_v39 = vshrl.u32 %v807_v36, 7 }
 0x174   : > { %1290 = vmatprep.subr.mxu0 %v840_v19  ;;  %v834_v31 = vld [vmem:[#allocation11 + $0x40] sm:$0xff]  ;;  %v833_v33 = vld [vmem:[#allocation11 + $0x38] sm:$0xff]  ;;  %v832_v34 = vld [vmem:[#allocation11 + $0x30] sm:$0xff] }
 0x175   : > { %1291 = vmatpush3.msra.mxu0 %v840_v19  ;;  %v793_v28 = vmul.f32 %v790_v25, %v790_v25  ;;  %v831_v35 = vld [vmem:[#allocation11 + $0x28] sm:$0xff]  ;;  %v830_v37 = vld [vmem:[#allocation11 + $0x20] sm:$0xff]  ;;  %v829_v38 = vld [vmem:[#allocation11 + $0x18] sm:$0xff]  ;;  %v809_v43 = vsub.s32 0, %v808_v39 }
 0x176   : > { %1292 = vmatprep.subr.mxu0 %v839_v20  ;;  %v828_v40 = vld [vmem:[#allocation11 + $0x10] sm:$0xff]  ;;  %v795_v41 = vld [vmem:[%s1896_s3] sm:$0x1]  ;;  %v827_v42 = vld [vmem:[#allocation11 + $0x8] sm:$0xff] }
 0x177   : > { %1293 = vmatpush3.msra.mxu0 %v839_v20  ;;  %v794_v30 = vsub.f32 %v792_v26, %v793_v28  ;;  %v826_v45 = vld [vmem:[#allocation11] sm:$0xff]  ;;  %v799_v47 = vld [vmem:[%s1897_s4] sm:$0x1]  ;;  %v927_v14 = vld [vmem:[#allocation6] sm:$0x1] }
 0x178   : > { %1294 = vmatprep.subr.mxu0 %v838_v21  ;;  %v804_v48 = vld [vmem:[%s803_s27] sm:$0xff]  ;;  %v805_v49 = vld [vmem:[%s803_s27 + $0x8] sm:$0xff] }
 0x179   : > { %1295 = vmatpush3.msra.mxu0 %v838_v21  ;;  %v796_v32 = vadd.f32 1e-05, %v794_v30  ;;  %v1132_v60 = vld [vmem:[%s1899_s6] ss:$0 sm:$0xff]  ;;  %v937_v17 = vld [vmem:[#allocation7] sm:$0x1] }
 0x17a   : > { %1296 = vmatprep.subr.mxu0 %v837_v24 }
 0x17b   : > { %1297 = vmatpush3.msra.mxu0 %v837_v24  ;;  %1421 = vrsqrt.f32 %v796_v32 }
 0x17c   : > { %1298 = vmatprep.subr.mxu0 %v836_v27 }
 0x17d   : > { %1299 = vmatpush3.msra.mxu0 %v836_v27 }
 0x17e   : > { %1300 = vmatprep.subr.mxu0 %v835_v29 }
 0x17f   : > { %1301 = vmatpush3.msra.mxu0 %v835_v29 }
 0x180   : > { %1302 = vmatprep.subr.mxu0 %v834_v31 }
 0x181   : > { %1303 = vmatpush3.msra.mxu0 %v834_v31 }
 0x182   : > { %1304 = vmatprep.subr.mxu0 %v833_v33 }
 0x183   : > { %1305 = vmatpush3.msra.mxu0 %v833_v33 }
 0x184   : > { %1306 = vmatprep.subr.mxu0 %v832_v34 }
 0x185   : > { %1307 = vmatpush3.msra.mxu0 %v832_v34 }
 0x186   : > { %1308 = vmatprep.subr.mxu0 %v831_v35 }
 0x187   : > { %1309 = vmatpush3.msra.mxu0 %v831_v35 }
 0x188   : > { %1310 = vmatprep.subr.mxu0 %v830_v37  ;;  %v1422_v44 = vpop.eup %1421 }
 0x189   : > { %1311 = vmatpush3.msra.mxu0 %v830_v37  ;;  %v798_v46 = vmul.f32 %v1422_v44, %v795_v41 }
 0x18a   : > { %1312 = vmatprep.subr.mxu0 %v829_v38 }
 0x18b   : > { %1313 = vmatpush3.msra.mxu0 %v829_v38  ;;  %v800_v50 = vmul.f32 %v798_v46, %v790_v25  ;;  %v810_v51 = vrot.slane %v798_v46, %v809_v43 }
 0x18c   : > { %1314 = vmatprep.subr.mxu0 %v828_v40 }
 0x18d   : > { %1315 = vmatpush3.msra.mxu0 %v828_v40  ;;  %v801_v52 = vsub.f32 %v799_v47, %v800_v50  ;;  %v812_v53 = vmul.f32 %v810_v51, %v804_v48  ;;  %v813_v54 = vmul.f32 %v810_v51, %v805_v49 }
 0x18e   : > { %1316 = vmatprep.subr.mxu0 %v827_v42 }
 0x18f   : > { %1317 = vmatpush3.msra.mxu0 %v827_v42  ;;  %v818_v55 = vrot.slane %v801_v52, %v809_v43 }
 0x190   : > { %1318 = vmatprep.subr.mxu0 %v826_v45 }
 0x191   : > { %1319 = vmatpush3.msra.mxu0 %v826_v45  ;;  %v820_v56 = vadd.f32 %v818_v55, %v812_v53  ;;  %v821_v57 = vadd.f32 %v818_v55, %v813_v54 }
 0x193   : > { %v822_v58 = vmax.f32 %v820_v56, 0.0  ;;  %v823_v59 = vmax.f32 %v821_v57, 0.0 }
 0x195   : > { %824 = vst [vmem:[%s803_s27] sm:$0xff] %v822_v58  ;;  %1320 = vmatprep.mubr.f32.mxu0 %v822_v58  ;;  %825 = vst [vmem:[%s803_s27 + $0x8] sm:$0xff] %v823_v59 }
 0x196   : > { %1321 = vmatmul.mubr.f32.vlgmr.msra.gmra.mxu0 %v823_v59 }
 0x256   : > { %v1322_v61 = vpop.f32.mrf.mxu0 }
 0x257   : > { %v921_v62 = vadd.f32 %v1322_v61, %v1132_v60 }
 0x258   : > { %v915_v63 = vpop.f32.mrf.mxu0 }
 0x259   : > { %926 = vst [vmem:[%s924_s17 + $0x8] sm:$0xff] %v921_v62  ;;  %v916_v0 = vadd.f32 %v1132_v60, %v915_v63  ;;  %v939_v1 = vmul.f32 %v921_v62, %v921_v62 }
 0x25b   : > { %925 = vst [vmem:[%s924_s17] sm:$0xff] %v916_v0  ;;  %v928_v2 = vadd.f32 %v921_v62, %v916_v0  ;;  %v938_v3 = vmul.f32 %v916_v0, %v916_v0 }
 0x25d   : > { %v929_v4 = vrot.slane %v928_v2, 4  ;;  %v940_v5 = vadd.f32 %v939_v1, %v938_v3 }
 0x25f   : > { %v930_v6 = vadd.f32 %v929_v4, %v928_v2  ;;  %v941_v7 = vrot.slane %v940_v5, 4 }
 0x261   : > { %v931_v8 = vrot.slane %v930_v6, 2  ;;  %v942_v9 = vadd.f32 %v941_v7, %v940_v5 }
 0x263   : > { %v932_v10 = vadd.f32 %v931_v8, %v930_v6  ;;  %v943_v11 = vrot.slane %v942_v9, 2 }
 0x265   : > { %v933_v12 = vrot.slane %v932_v10, 1  ;;  %v944_v13 = vadd.f32 %v943_v11, %v942_v9 }
 0x267   : > { %v934_v15 = vadd.f32 %v933_v12, %v932_v10  ;;  %v945_v16 = vrot.slane %v944_v13, 1 }
 0x269   : > { %v935_v18 = vadd.f32 %v934_v15, %v927_v14  ;;  %v946_v19 = vadd.f32 %v945_v16, %v944_v13 }
 0x26b   : > { %936 = vst [vmem:[#allocation6] sm:$0x1] %v935_v18  ;;  %v947_v20 = vadd.f32 %v946_v19, %v937_v17 }
 0x26d   : > { %948 = vst [vmem:[#allocation7] sm:$0x1] %v947_v20 }
 0x26e PF: > { %p1133_p0 = scmp.ne.s32.totalorder %s1565_s13, 2 }
 0x26f   : > { %s1134_s22 = sshll.u32 (!%p1133_p0), %s1561_s12, 4 }
 0x270   : > { %952 = sbr.rel (%p1133_p0) target bundleno = 667 (0x29b), region = 80  ;;  %s967_s21 = scalar_lea.vmem (!%p1133_p0), [#allocation3], %s1134_s22 }
 0x271   : > { %s988_s27 = scalar_lea.vmem (!%p1133_p0), [#allocation2], %s1134_s22 }
 0x275   : > { %v953_v21 = vld [vmem:[#allocation6] sm:$0x1]  ;;  %v955_v22 = vld [vmem:[#allocation7] sm:$0x1]  ;;  %v971_v28 = vlaneseq  ;;  %v959_v30 = vld [vmem:[%s1900_s7] sm:$0x1] }
 0x276   : > { %v954_v23 = vmul.f32 0.03125, %v953_v21  ;;  %v956_v24 = vmul.f32 0.03125, %v955_v22  ;;  %v963_v34 = vld [vmem:[%s1901_s8] sm:$0x1]  ;;  %v969_v36 = vld [vmem:[%s967_s21 + $0x8] sm:$0xff] }
 0x277   : > { %v972_v29 = vshrl.u32 %v971_v28, 7  ;;  %v968_v35 = vld [vmem:[%s967_s21] sm:$0xff]  ;;  %v990_v46 = vld [vmem:[%s988_s27 + $0x8] sm:$0xff] }
 0x278   : > { %v957_v25 = vmul.f32 %v954_v23, %v954_v23  ;;  %v989_v45 = vld [vmem:[%s988_s27] sm:$0xff] }
 0x279   : > { %v973_v31 = vsub.s32 0, %v972_v29 }
 0x27a   : > { %v958_v26 = vsub.f32 %v956_v24, %v957_v25 }
 0x27c   : > { %v960_v27 = vadd.f32 1e-05, %v958_v26 }
 0x27e   : > { %1423 = vrsqrt.f32 %v960_v27 }
 0x28b   : > { %v1424_v32 = vpop.eup %1423 }
 0x28c   : > { %v962_v33 = vmul.f32 %v1424_v32, %v959_v30 }
 0x28e   : > { %v964_v37 = vmul.f32 %v962_v33, %v954_v23  ;;  %v974_v38 = vrot.slane %v962_v33, %v973_v31 }
 0x290   : > { %v965_v39 = vsub.f32 %v963_v34, %v964_v37  ;;  %v976_v40 = vmul.f32 %v974_v38, %v968_v35  ;;  %v977_v41 = vmul.f32 %v974_v38, %v969_v36 }
 0x292   : > { %v982_v42 = vrot.slane %v965_v39, %v973_v31 }
 0x294   : > { %v984_v43 = vadd.f32 %v982_v42, %v976_v40  ;;  %v985_v44 = vadd.f32 %v982_v42, %v977_v41 }
 0x296   : > { %v986_v47 = vmax.f32 %v984_v43, 0.0  ;;  %v987_v48 = vmax.f32 %v985_v44, 0.0 }
 0x298   : > { %v991_v49 = vadd.f32 %v989_v45, %v986_v47  ;;  %v992_v50 = vadd.f32 %v990_v46, %v987_v48 }
 0x29a   : > { %993 = vst [vmem:[%s1763_s25] sm:$0xff] %v991_v49  ;;  %994 = vst [vmem:[%s1763_s25 + $0x8] sm:$0xff] %v992_v50 }
 0x29b PF: > { %p1003_p1 = scmp.eq.s32.totalorder %s1565_s13, 2  ;;  %s1011_s28 = sshll.u32 %s1763_s25, 4  ;;  %s1833_s28 = int_to_ptr.vmem [resolvable:$true] %s1011_s28 }
 0x29c   : > { %s1842_s19 = scalar_lea.sflag [#allocation10], %s379_s14  ;;  %s1477_s26 = scalar_lea.vmem %s1833_s28, 256 }
 0x29d   : > { %s1933_s12 = smov (!%p1003_p1, %s1561_s12), 0  ;;  %p1478_p4 = scmp.ne.s32.totalorder %s1833_s28, %s1477_s26 }
 0x29e   : > { %s1140_s29 = sshll.u32 %s1933_s12, 8  ;;  %s1584_s13 = smov [#allocation13]  }
 0x29f   : > { %s1838_s15 = scalar_lea.hbm %s1902_s9, %s1140_s29  ;;  %p1479_p5 = pnand %p1478_p4, %p1693_p7 }
 0x2a0   : > { %s1481_s25 = sshll.u32 %s1584_s13, 4  ;;  %s1482_s25 = int_to_ptr.vmem [resolvable:$false] %s1481_s25 }
 0x2a1   : > { %p1480_p9 = pneg %p1479_p5  ;;  %s1483_s18 = scalar_lea.vmem %s1482_s25, 512 }
 0x2a2   : > { %p1484_p6 = scmp.lt.s32.totalorder %s1833_s28, %s1482_s25  ;;  %p1485_p10 = scmp.lt.s32.totalorder %s1483_s18, %s1477_s26 }
 0x2a4   : > { %p1486_p8 = por %p1485_p10, %p1484_p6 }
 0x2a6   : > { %p1487_p12 = pnand %p1486_p8, %p1480_p9 }
 0x2a8   : > { %1490 = shalt.err (!%p1487_p12)
}
 0x2a9   : > { %s1491_s12 = scalar_lea.hbm %s1838_s15, 256  ;;  %s1495_s27 = scalar_lea.hbm %s1902_s9, 512 }
 0x2aa   : > { %p1492_p2 = scmp.ne.s32.totalorder %s1838_s15, %s1491_s12  ;;  %p1496_p11 = scmp.lt.s32.totalorder %s1838_s15, %s1902_s9 }
 0x2ab   : > { %p1497_p0 = scmp.lt.s32.totalorder %s1495_s27, %s1491_s12 }
 0x2ac   : > { %p1493_p3 = pnand %p1492_p2, %p1693_p7 }
 0x2ad   : > { %p1498_p1 = por %p1497_p0, %p1496_p11 }
 0x2ae   : > { %p1494_p13 = pneg %p1493_p3 }
 0x2b0   : > { %p1499_p4 = pnand %p1498_p1, %p1494_p13 }
 0x2b2   : > { %1502 = shalt.err (!%p1499_p4)
}
 0x2b3   : > { %s1585_s22 = smov 128   ;;  %s1586_s26 = smov 8  }
 0x2b4   : > { %1332 = dma.vmem_to_hbm [thread:$0]  (%p1693_p7), %s1833_s28, 256, %s1838_s15, %s1842_s19, %s1585_s22, %s1585_s22, %s1586_s26  }
 0x2b5 PF: > { %p1349_p5 = scmp.ge.s32.totalorder %s1577_s16, 2  ;;  %s1026_s13 = sand.u32 1, %s1549_s30  }
 0x2b6   : > { %p1916_p9 = scmp.ne.s32.totalorder %s1912_s24, 0  ;;  %s1027_s25 = scalar_lea.sflag [#allocation10], %s1026_s13 }
 0x2b8   : > { %p1342_p6 = pnand %p1349_p5, %p1916_p9 }
 0x2ba   : > { %p1343_p10 = pneg %p1342_p6 }
 0x2bc   : > { %1544 = dma.done.wait (%p1343_p10), %s1027_s25, 256  }
 0x2bd   : > { %1546 = vsyncadd (%p1343_p10), %s1027_s25, 4294967040  ;;  %s24_s16 = sadd.s32 1, %s1577_s16   ;;  %s1917_s12 = sld [smem:[#allocation17_spill]] }
 0x2be   : > { %p21_p8 = scmp.ge.s32.totalorder %s24_s16, 8   ;;  %s1918_s13 = sld [smem:[#allocation18_spill]] }
 0x2bf   : > { %s1919_s14 = sld [smem:[#allocation19_spill]]  ;;  %s1921_s30 = smov %s1553_s10 }
 0x2c0   : > { %s1920_s15 = sld [smem:[#allocation20_spill]]  ;;  %s1922_s10 = smov %s1557_s11 }
 0x2c1   : > { %s1923_s11 = smov %s1716_s20  ;;  %23 = sbr.rel (!%p21_p8) target bundleno = 7 (0x7), region = 121 }
 0x2c6   :  { %1032 = vsyncpa [#allocation9], 1 }
 0x2c7   :  { %1034 = vsyncpa [#allocation9 + $0x1], 1 }
 0x2c8   :  { %1035 = vsyncpa [#allocation12], 1 }
 0x2c9   :  { %1036 = vsyncpa [#allocation10], 1 }
 0x2ca   :  { %1038 = vsyncpa [#allocation10 + $0x1], 1 }

</bundles_post_ra>
